<compile_context>
chip_gen: v6e
topology: v6e:2x2x1
jax: 0.10.0
libtpu: 0.0.40
codegen_flags: <defaults>
</compile_context>

<pallas_src>
import functools

import jax
import jax.numpy as jnp
from jax.experimental import pallas as pl
from jax.experimental.pallas import tpu as pltpu

LANES = 128
MAX_BLOCK_ROWS = 4096   # (4096, 128) f32 = 2 MiB per buffer (safe on v5e/v6e/v7x defaults)
ROW_ALIGN = 32          # sublane alignment that covers f32(8) / bf16(16) / int8-fp8(32) packing


def _lsq_act_kernel(scale_ref, x_ref, o_ref, *, valmin, valmax, skip_bit):
    # scale_ref : SMEM (1,) f32 scalar step size
    # x_ref     : VMEM (block_rows, 128) tile of the flattened input
    # o_ref     : VMEM (block_rows, 128) tile of the flattened output
    scale = scale_ref[0]
    inv_scale = 1.0 / scale                 # scalar reciprocal, hoisted off the vector path
    x = x_ref[...].astype(jnp.float32)

    x_scale = x * inv_scale                 # x / scale
    x_clip = jnp.clip(x_scale, valmin, valmax)   # F.hardtanh(min_val, max_val)
    x_round = jnp.round(x_clip)                  # half-to-even, same as torch.round

    if skip_bit:                            # static (trace-time) branch
        factor = float(2 ** skip_bit)
        inv_factor = 1.0 / factor           # exact (power of two)
        sign = jnp.sign(x_round)
        x_round = jnp.floor(jnp.abs(x_round) * inv_factor) * factor * sign

    o_ref[...] = (x_round * scale).astype(o_ref.dtype)


def lsq_activation_forward(x, scale, *, valmin, valmax, skip_bit=None):
    """LSQ activation quantize-dequantize. x: any shape (NCHW here), scale: shape (1,)."""
    orig_shape = x.shape
    orig_dtype = x.dtype

    flat = x.reshape(-1)
    n = flat.shape[0]

    # Pad only if the element count is not lane-aligned (common case: no pad, no slice).
    pad = (-n) % LANES
    if pad:
        flat = jnp.pad(flat, (0, pad))
    rows = flat.shape[0] // LANES
    x2 = flat.reshape(rows, LANES)

    # Pick the row-block size:
    #   - tiny tensors: one full-array block (full-dim blocks bypass the (8,128) rule).
    #   - otherwise: at least 2 grid steps (v7x has 2 TensorCores), aligned to the
    #     packed-sublane tile, capped at ~2 MiB f32 per buffer.
    if rows <= ROW_ALIGN:
        block_rows = rows
    else:
        half = -(-rows // 2)                                  # ceil(rows / 2)
        half_aligned = -(-half // ROW_ALIGN) * ROW_ALIGN      # round up to ROW_ALIGN
        block_rows = min(MAX_BLOCK_ROWS, half_aligned)
    grid = (pl.cdiv(rows, block_rows),)

    kernel = functools.partial(
        _lsq_act_kernel,
        valmin=float(valmin),
        valmax=float(valmax),
        skip_bit=skip_bit,
    )

    n_elems = rows * LANES
    itemsize = jnp.dtype(orig_dtype).itemsize
    cost = pl.CostEstimate(
        flops=5 * n_elems,
        transcendentals=0,
        bytes_accessed=2 * n_elems * itemsize,
    )

    out2 = pl.pallas_call(
        kernel,
        out_shape=jax.ShapeDtypeStruct((rows, LANES), orig_dtype),
        grid=grid,
        in_specs=[
            pl.BlockSpec(memory_space=pltpu.SMEM),                    # scale scalar
            pl.BlockSpec((block_rows, LANES), lambda i: (i, 0)),      # x tile
        ],
        out_specs=pl.BlockSpec((block_rows, LANES), lambda i: (i, 0)),
        compiler_params=pltpu.CompilerParams(
            dimension_semantics=("parallel",)),
        cost_estimate=cost,
    )(scale.astype(jnp.float32), x2)

    out_flat = out2.reshape(-1)
    if pad:
        out_flat = out_flat[:n]
    return out_flat.reshape(orig_shape)


def _reference(x, scale, valmin, valmax, skip_bit=None):
    # Pure-JAX reference mirroring the PyTorch forward.
    s = scale.astype(jnp.float32)[0]
    x_scale = x.astype(jnp.float32) / s
    x_clip = jnp.clip(x_scale, valmin, valmax)
    x_round = jnp.round(x_clip)
    if skip_bit:
        factor = 2.0 ** skip_bit
        sign = jnp.sign(x_round)
        x_round = jnp.floor(jnp.abs(x_round) / factor) * factor * sign
    return (x_round * s).astype(x.dtype)


if __name__ == "__main__":
    # 4-bit unsigned activation constraint, like constraint = torch.arange(0, 2**4)
    constraint = jnp.arange(0, 2 ** 4, dtype=jnp.float32)
    valmin = float(constraint.min())
    valmax = float(constraint.max())

    key = jax.random.PRNGKey(0)
    kx, k2, k3 = jax.random.split(key, 3)

    # Learnable step-size parameter, shape (1,), deterministic positive init.
    scale = jnp.array([0.25], dtype=jnp.float32)

    # --- main case: NCHW activation tensor, lane-aligned, single full block ---
    x = jax.random.normal(kx, (2, 4, 16, 16), dtype=jnp.float32) * 3.0
    out = jax.block_until_ready(
        lsq_activation_forward(x, scale, valmin=valmin, valmax=valmax))
    ref = _reference(x, scale, valmin, valmax)
    assert out.shape == x.shape and out.dtype == x.dtype
    assert jnp.allclose(out, ref, atol=1e-6), "mismatch vs reference"

    # --- skip_bit path ---
    out_sb = jax.block_until_ready(
        lsq_activation_forward(x, scale, valmin=valmin, valmax=valmax, skip_bit=1))
    ref_sb = _reference(x, scale, valmin, valmax, skip_bit=1)
    assert jnp.allclose(out_sb, ref_sb, atol=1e-6), "mismatch vs reference (skip_bit)"

    # --- multi-block path (grid > 1, parallel across TCs on v7x) ---
    x_big = jax.random.normal(k2, (4, 8, 32, 32), dtype=jnp.float32) * 2.0
    out_big = jax.block_until_ready(
        lsq_activation_forward(x_big, scale, valmin=valmin, valmax=valmax))
    ref_big = _reference(x_big, scale, valmin, valmax)
    assert jnp.allclose(out_big, ref_big, atol=1e-6), "mismatch vs reference (multi-block)"

    # --- ragged case: numel not a multiple of 128 (exercises the pad/unpad fallback) ---
    x_odd = jax.random.normal(k3, (1, 3, 37, 29), dtype=jnp.float32) * 3.0
    out_odd = jax.block_until_ready(
        lsq_activation_forward(x_odd, scale, valmin=valmin, valmax=valmax))
    ref_odd = _reference(x_odd, scale, valmin, valmax)
    assert jnp.allclose(out_odd, ref_odd, atol=1e-6), "mismatch vs reference (ragged)"

    print("KERNEL_OK")
</pallas_src>

<mosaic_0001>
module attributes {stable_mosaic.version = 11 : i64} {
  func.func @_lsq_act_kernel(%arg0: i32, %arg1: memref<1xf32, #tpu.memory_space<smem>>, %arg2: memref<16x128xf32, #tpu.memory_space<vmem>>, %arg3: memref<16x128xf32, #tpu.memory_space<vmem>>) attributes {dimension_semantics = [#tpu.dimension_semantics<parallel>], iteration_bounds = array<i64: 1>, scalar_prefetch = 0 : i64, scratch_operands = 0 : i64, tpu.core_type = #tpu.core_type<tc>, window_params = [{transform_indices = @transform_0, window_bounds = array<i64: 1>}, {transform_indices = @transform_1, window_bounds = array<i64: 16, 128>}, {transform_indices = @transform_2, window_bounds = array<i64: 16, 128>}]} {
    %c0 = arith.constant 0 : index
    %0 = memref.load %arg1[%c0] : memref<1xf32, #tpu.memory_space<smem>>
    %cst = arith.constant 1.000000e+00 : f32
    %1 = arith.divf %cst, %0 : f32
    %c0_0 = arith.constant 0 : index
    %c0_1 = arith.constant 0 : index
    %2 = vector.load %arg2[%c0_0, %c0_1] : memref<16x128xf32, #tpu.memory_space<vmem>>, vector<16x128xf32>
    %3 = vector.broadcast %1 : f32 to vector<16x128xf32>
    %4 = arith.mulf %2, %3 : vector<16x128xf32>
    %cst_2 = arith.constant 0.000000e+00 : f32
    %cst_3 = arith.constant 1.500000e+01 : f32
    %5 = vector.broadcast %cst_2 : f32 to vector<16x128xf32>
    %6 = arith.maximumf %5, %4 : vector<16x128xf32>
    %7 = vector.broadcast %cst_3 : f32 to vector<16x128xf32>
    %8 = arith.minimumf %7, %6 : vector<16x128xf32>
    %9 = math.roundeven %8 : vector<16x128xf32>
    %10 = vector.broadcast %0 : f32 to vector<16x128xf32>
    %11 = arith.mulf %9, %10 : vector<16x128xf32>
    %c0_4 = arith.constant 0 : index
    %c0_5 = arith.constant 0 : index
    %12 = vector.load %arg3[%c0_4, %c0_5] : memref<16x128xf32, #tpu.memory_space<vmem>>, vector<16x128xf32>
    tpu.vector_store %arg3[%c0_4, %c0_5], %11 {strides = array<i32>} : memref<16x128xf32, #tpu.memory_space<vmem>>, vector<16x128xf32>,
    return
  }
  func.func @transform_0(%arg0: i32) -> i32 {
    %c0_i32 = arith.constant 0 : i32
    %c0_i32_0 = arith.constant 0 : i32
    return %c0_i32 : i32
  }
  func.func @transform_1(%arg0: i32) -> (i32, i32) {
    %c0_i32 = arith.constant 0 : i32
    %c0_i32_0 = arith.constant 0 : i32
    return %arg0, %c0_i32 : i32, i32
  }
  func.func @transform_2(%arg0: i32) -> (i32, i32) {
    %c0_i32 = arith.constant 0 : i32
    %c0_i32_0 = arith.constant 0 : i32
    return %arg0, %c0_i32 : i32, i32
  }
}

</mosaic_0001>

<bundles_post_ra>
// kernel: tpu_custom_call.1
= control target key start
LH: loop header
LB: loop body
LE: loop exit
PB: predicated region body
PF: predicated region fallthrough
CT: control target
= control target key end

     0   :  { %8 = vsyncpa [#allocation4], 0  ;;  %s166_s0 = inlined_call_operand.<no memory space> [shape: f32[1], index: 0, kind: input, shape index: {}]   ;;  %s167_s1 = inlined_call_operand.hbm [shape: f32[16,128], index: 1, kind: input, shape index: {}]   ;;  %s168_s2 = inlined_call_operand.hbm [shape: f32[16,128], index: 2, kind: output, shape index: {}]  }
   0x1   :  { %9 = vsyncpa [#allocation5], 0  ;;  %s132_s9 = smov [#allocation3]  }
   0x2   :  { %s17_s10 = sshll.u32 %s132_s9, 4  ;;  %s18_s10 = int_to_ptr.vmem [resolvable:$true] %s17_s10 }
   0x3   :  { %s96_s11 = scalar_lea.vmem %s18_s10, 256  ;;  %p101_p1 = scmp.lt.s32.totalorder %s18_s10, %s18_s10 }
   0x4   :  { %p97_p0 = scmp.ne.s32.totalorder %s18_s10, %s96_s11  ;;  %p102_p2 = scmp.lt.s32.totalorder %s96_s11, %s96_s11 }
   0x6   :  { %p103_p3 = por %p102_p2, %p101_p1 }
   0x8   :  { %p104_p4 = pnand %p103_p3, %p97_p0 }
   0xa   :  { %107 = shalt.err (!%p104_p4)
}
   0xb   :  { %s133_s12 = smov 128   ;;  %s134_s13 = smov 8   ;;  %v28_v0 = vstv %s166_s0 }
   0xc   :  { %23 = dma.hbm_to_vmem [thread:$0]  %s167_s1, 256, %s18_s10, [#allocation4], %s133_s12, %s133_s12, %s134_s13  }
   0xd   :  { %128 = dma.done.wait [#allocation4], 256  }
   0xe   :  { %129 = vsyncadd [#allocation4], 4294967040  ;;  %86 = vrcp.f32 %v28_v0  ;;  %v31_v2 = vld [vmem:[#allocation3] sm:$0xff]  ;;  %v32_v3 = vld [vmem:[#allocation3 + $0x8] sm:$0xff]  ;;  %s135_s0 = smov [#allocation6]  }
   0xf   :  { %s52_s1 = sshll.u32 %s135_s0, 4  ;;  %s53_s1 = int_to_ptr.vmem [resolvable:$true] %s52_s1 }
  0x10   :  { %s108_s19 = scalar_lea.vmem %s53_s1, 256  ;;  %p113_p6 = scmp.lt.s32.totalorder %s53_s1, %s53_s1 }
  0x11   :  { %p109_p5 = scmp.ne.s32.totalorder %s53_s1, %s108_s19  ;;  %p114_p7 = scmp.lt.s32.totalorder %s108_s19, %s108_s19 }
  0x13   :  { %p115_p8 = por %p114_p7, %p113_p6 }
  0x15   :  { %p116_p9 = pnand %p115_p8, %p109_p5 }
  0x1b   :  { %v87_v1 = vpop.eup %86 }
  0x1c   :  { %64 = vpush %v87_v1 }
  0x4d   :  { %s65_s18 = spop %64 }
  0x4e   :  { %v33_v4 = vstv %s65_s18 }
  0x4f   :  { %v34_v5 = vmul.f32 %v33_v4, %v31_v2  ;;  %v35_v6 = vmul.f32 %v33_v4, %v32_v3 }
  0x51   :  { %v36_v7 = vmax.f32 %v34_v5, 0.0  ;;  %v37_v8 = vmax.f32 %v35_v6, 0.0 }
  0x53   :  { %v38_v9 = vmin.f32 %v36_v7, 15.0  ;;  %v39_v10 = vmin.f32 %v37_v8, 15.0 }
  0x55   :  { %v68_v11 = vcvt.f32.s32 %v38_v9  ;;  %v76_v12 = vcvt.f32.s32 %v39_v10  ;;  %v66_v15 = vand.u32 2147483647, %v38_v9  ;;  %v74_v16 = vand.u32 2147483647, %v39_v10 }
  0x56   :  { %v71_v18 = vand.u32 2147483648, %v38_v9  ;;  %v79_v20 = vand.u32 2147483648, %v39_v10 }
  0x57   :  { %v69_v13 = vcvt.s32.f32 %v68_v11  ;;  %v77_v14 = vcvt.s32.f32 %v76_v12  ;;  %vm67_vm0 = vcmp.lt.f32.partialorder %v66_v15, 8388608.0  ;;  %vm75_vm1 = vcmp.lt.f32.partialorder %v74_v16, 8388608.0 }
  0x59   :  { %v70_v17 = vand.u32 2147483647, %v69_v13  ;;  %v78_v19 = vand.u32 2147483647, %v77_v14 }
  0x5b   :  { %v72_v21 = vor.u32 %v71_v18, %v70_v17  ;;  %v80_v22 = vor.u32 %v79_v20, %v78_v19 }
  0x5d   :  { %v73_v23 = vsel %vm67_vm0, %v72_v21, %v38_v9  ;;  %v81_v24 = vsel %vm75_vm1, %v80_v22, %v39_v10 }
  0x5e   :  { %v43_v25 = vmul.f32 %v73_v23, %v28_v0  ;;  %v44_v26 = vmul.f32 %v81_v24, %v28_v0 }
  0x60   :  { %45 = vst [vmem:[#allocation6] sm:$0xff] %v43_v25  ;;  %46 = vst [vmem:[#allocation6 + $0x8] sm:$0xff] %v44_v26 }
  0x61   :  { %119 = shalt.err (!%p116_p9)
}
  0x62   :  { %58 = dma.vmem_to_hbm [thread:$0]  %s53_s1, 256, %s168_s2, [#allocation5], %s133_s12, %s133_s12, %s134_s13  }
  0x63   :  { %130 = dma.done.wait [#allocation5], 256  }
  0x64   :  { %131 = vsyncadd [#allocation5], 4294967040 }
  0x65   :  { %62 = vsyncpa [#allocation4], 1 }
  0x66   :  { %63 = vsyncpa [#allocation5], 1 }

</bundles_post_ra>
